<compile_context>
chip_gen: v6e
topology: v6e:2x2x1
jax: 0.10.0
libtpu: 0.0.40
codegen_flags: <defaults>
</compile_context>

<pallas_src>
import functools

import jax
import jax.numpy as jnp
from jax.experimental import pallas as pl
from jax.experimental.pallas import tpu as pltpu


# --------------------------------------------------------------------------
# Helpers
# --------------------------------------------------------------------------
_LANE = 128          # vreg lane width: keep output last dims multiples of this
_SUBLANE = 8         # vreg sublane granularity for f32
_FUSED_VMEM_BUDGET = 24 << 20   # conservative (fits v7x 32 MiB scoped default)
_FUSED_TM_PREF = 512            # preferred row tile for the fused-MLP path
_VMEM_LIMIT = 32 << 20          # <= physical on every chip generation


def _round_up(x, m):
    return ((x + m - 1) // m) * m


def _apply_activation(y, act):
    """act: None | 'relu' | 'tanh' | 'sigmoid' | 'gelu' | callable."""
    if act is None or act == "identity":
        return y
    if callable(act):
        return act(y)
    if act == "relu":
        return jnp.maximum(y, 0.0)
    if act == "tanh":
        return jnp.tanh(y)          # EUP slot -> effectively free in epilogue
    if act == "sigmoid":
        return jax.nn.sigmoid(y)
    if act == "gelu":
        return jax.nn.gelu(y)
    raise ValueError(f"unknown activation: {act!r}")


def _choose_tm(M, pref):
    """Row tile: multiple of 8 (or the full M), capped at `pref`, and exposing
    >= 2 grid tiles when possible so both v7x TensorCores get work (no-op cost
    on the single-core v5e/v6e)."""
    if M <= _SUBLANE:
        return M                                   # full dim: always legal
    if M <= 2 * pref:
        return min(_round_up(pl.cdiv(M, 2), _SUBLANE), _round_up(M, _SUBLANE))
    return pref


def _fused_vmem_bytes(M, dims, tm_pref, compute_dtype):
    """Conservative VMEM footprint of the fully fused MLP kernel (everything
    counted double-buffered, lane dims rounded up to 128)."""
    csize = jnp.dtype(compute_dtype).itemsize
    tm = _choose_tm(M, tm_pref)
    lane = [_round_up(max(d, _LANE), _LANE) for d in dims]
    w_bytes = sum(k * n for k, n in zip(dims[:-1], lane[1:])) * csize
    b_bytes = sum(lane[1:]) * 4
    x_bytes = tm * _round_up(dims[0], _LANE) * 4
    o_bytes = tm * lane[-1] * 4
    h_bytes = 2 * tm * max(lane) * 4               # live intermediates
    return 2 * (w_bytes + b_bytes + x_bytes + o_bytes) + h_bytes


# --------------------------------------------------------------------------
# Path A: whole MLP fused into one kernel (weights resident in VMEM)
# --------------------------------------------------------------------------
def _fused_mlp_kernel(*refs, n_layers, acts, compute_dtype):
    x_ref = refs[0]
    w_refs = refs[1:1 + n_layers]
    b_refs = refs[1 + n_layers:1 + 2 * n_layers]
    o_ref = refs[1 + 2 * n_layers]

    h = x_ref[...]
    for i in range(n_layers):                      # unrolled at trace time
        lhs = h.astype(compute_dtype)
        rhs = w_refs[i][...].astype(compute_dtype)
        y = jnp.dot(lhs, rhs, preferred_element_type=jnp.float32)
        y = y + b_refs[i][...].astype(jnp.float32)
        h = _apply_activation(y, acts[i])
    o_ref[...] = h.astype(o_ref.dtype)


def fused_mlp(x2d, weights, biases, acts, *, compute_dtype=jnp.float32,
              tm_pref=_FUSED_TM_PREF):
    """Run the whole MLP in a single pallas_call; grid only over M."""
    M, K0 = x2d.shape
    n_layers = len(weights)
    n_last = weights[-1].shape[1]
    n_last_pad = _round_up(max(n_last, _LANE), _LANE)   # lane-dense output

    ws, bs = [], []
    for i, (w, b) in enumerate(zip(weights, biases)):
        if i == n_layers - 1 and n_last_pad != n_last:
            w = jnp.pad(w, ((0, 0), (0, n_last_pad - n_last)))
            b = jnp.pad(b, (0, n_last_pad - n_last))
        ws.append(w.astype(compute_dtype))              # bf16 halves W traffic
        bs.append(b.reshape(1, -1).astype(jnp.float32))

    tm = _choose_tm(M, tm_pref)
    grid = (pl.cdiv(M, tm),)

    in_specs = [pl.BlockSpec((tm, K0), lambda i: (i, 0))]
    in_specs += [pl.BlockSpec(w.shape, lambda i: (0, 0)) for w in ws]
    in_specs += [pl.BlockSpec(b.shape, lambda i: (0, 0)) for b in bs]

    kernel = functools.partial(
        _fused_mlp_kernel, n_layers=n_layers, acts=tuple(acts),
        compute_dtype=compute_dtype)

    out = pl.pallas_call(
        kernel,
        out_shape=jax.ShapeDtypeStruct((M, n_last_pad), jnp.float32),
        grid_spec=pltpu.PrefetchScalarGridSpec(
            num_scalar_prefetch=0,
            grid=grid,
            in_specs=in_specs,
            out_specs=pl.BlockSpec((tm, n_last_pad), lambda i: (i, 0)),
            scratch_shapes=[],
        ),
        compiler_params=pltpu.CompilerParams(
            dimension_semantics=("parallel",),
            vmem_limit_bytes=_VMEM_LIMIT,
        ),
    )(x2d, *ws, *bs)

    return out[:, :n_last] if n_last_pad != n_last else out


# --------------------------------------------------------------------------
# Path B: per-layer fused Linear (+bias +act) for MLPs too big for VMEM
# --------------------------------------------------------------------------
def _linear_kernel(x_ref, w_ref, b_ref, o_ref, acc_ref, *, activation,
                   compute_dtype):
    k = pl.program_id(2)

    @pl.when(k == 0)
    def _():
        acc_ref[...] = jnp.zeros_like(acc_ref)

    acc_ref[...] += jnp.dot(
        x_ref[...].astype(compute_dtype),
        w_ref[...].astype(compute_dtype),
        preferred_element_type=jnp.float32,
    )

    @pl.when(k == pl.num_programs(2) - 1)
    def _():
        y = acc_ref[...] + b_ref[...].astype(jnp.float32)
        y = _apply_activation(y, activation)
        o_ref[...] = y.astype(o_ref.dtype)


def fused_linear(x2d, w, b, activation=None, *, compute_dtype=jnp.float32,
                 out_dtype=jnp.float32, tm=256, tn=256, tk=512):
    """y = act(x2d @ w + b), tiled GEMM with f32 VMEM accumulator.
    Tile defaults keep the double-buffered footprint ~3 MiB (safe on every
    chip); on v5e/v6e with big layers they can be raised to 512/512/1024."""
    M, K = x2d.shape
    K2, N = w.shape
    assert K == K2 and b.shape == (N,)

    # Lane-dense output: pad N to a 128 multiple (zero cols => zero outputs,
    # sliced off below).  Avoids masked vst.msk stores and wasted MXU columns.
    N_pad = _round_up(max(N, _LANE), _LANE)
    if N_pad != N:
        w = jnp.pad(w, ((0, 0), (0, N_pad - N)))
        b = jnp.pad(b, (0, N_pad - N))

    # K tiling: whole K for small layers, otherwise a 128-multiple tile with
    # explicit ZERO padding so edge K blocks never accumulate garbage.
    if K <= tk:
        tk_eff, K_pad = K, K
    else:
        tk_eff = tk
        K_pad = _round_up(K, tk_eff)
        if K_pad != K:
            x2d = jnp.pad(x2d, ((0, 0), (0, K_pad - K)))
            w = jnp.pad(w, ((0, K_pad - K), (0, 0)))

    tn_eff = min(tn, N_pad)
    tm_eff = _choose_tm(M, tm)
    grid = (pl.cdiv(M, tm_eff), pl.cdiv(N_pad, tn_eff), K_pad // tk_eff)

    w = w.astype(compute_dtype)                  # bf16 halves W HBM traffic
    b2d = b.reshape(1, N_pad).astype(jnp.float32)
    kernel = functools.partial(_linear_kernel, activation=activation,
                               compute_dtype=compute_dtype)

    out = pl.pallas_call(
        kernel,
        out_shape=jax.ShapeDtypeStruct((M, N_pad), out_dtype),
        grid_spec=pltpu.PrefetchScalarGridSpec(
            num_scalar_prefetch=0,
            grid=grid,
            in_specs=[
                pl.BlockSpec((tm_eff, tk_eff), lambda i, j, k: (i, k)),
                pl.BlockSpec((tk_eff, tn_eff), lambda i, j, k: (k, j)),
                pl.BlockSpec((1, tn_eff), lambda i, j, k: (0, j)),
            ],
            out_specs=pl.BlockSpec((tm_eff, tn_eff), lambda i, j, k: (i, j)),
            scratch_shapes=[pltpu.VMEM((tm_eff, tn_eff), jnp.float32)],
        ),
        compiler_params=pltpu.CompilerParams(
            dimension_semantics=("parallel", "parallel", "arbitrary"),
            vmem_limit_bytes=_VMEM_LIMIT,
        ),
    )(x2d, w, b2d)

    return out[:, :N] if N_pad != N else out


# --------------------------------------------------------------------------
# JAX/Pallas mirror of the PyTorch MLP module
# --------------------------------------------------------------------------
class MLPPallas:
    def __init__(self, dims, key, activation="relu", output_activation=None,
                 squeeze_output=False, compute_dtype=jnp.float32, fuse=None):
        if len(dims) < 2:
            raise ValueError("MLP requires at least two dims (input and output)")
        if squeeze_output and dims[-1] != 1:
            raise ValueError("Last dim must be 1 when squeezing")
        self.dims = tuple(dims)
        self.activation = activation
        self.output_activation = output_activation
        self.squeeze_output = squeeze_output
        self.compute_dtype = compute_dtype
        self.fuse = fuse        # None = auto (based on VMEM fit)

        # nn.Linear-style init: U(-1/sqrt(fan_in), 1/sqrt(fan_in)); weights
        # stored (in, out) so kernels compute x @ W + b directly.
        self.weights, self.biases = [], []
        for i in range(len(dims) - 1):
            fan_in, fan_out = dims[i], dims[i + 1]
            key, wk, bk = jax.random.split(key, 3)
            bound = 1.0 / float(fan_in) ** 0.5
            self.weights.append(
                jax.random.uniform(wk, (fan_in, fan_out), jnp.float32,
                                   minval=-bound, maxval=bound))
            self.biases.append(
                jax.random.uniform(bk, (fan_out,), jnp.float32,
                                   minval=-bound, maxval=bound))

    def __call__(self, x):
        leading = x.shape[:-1]
        h = x.reshape(-1, self.dims[0]).astype(jnp.float32)
        M = h.shape[0]
        n_layers = len(self.weights)
        acts = tuple(
            self.activation if i < n_layers - 1 else self.output_activation
            for i in range(n_layers))

        use_fused = self.fuse
        if use_fused is None:
            use_fused = (_fused_vmem_bytes(M, self.dims, _FUSED_TM_PREF,
                                           self.compute_dtype)
                         <= _FUSED_VMEM_BUDGET)

        if use_fused:
            out = fused_mlp(h, self.weights, self.biases, acts,
                            compute_dtype=self.compute_dtype)
        else:
            for i, (w, b) in enumerate(zip(self.weights, self.biases)):
                is_last = i == n_layers - 1
                out_dtype = jnp.float32 if is_last else self.compute_dtype
                h = fused_linear(h, w, b, activation=acts[i],
                                 compute_dtype=self.compute_dtype,
                                 out_dtype=out_dtype)
            out = h

        out = out.reshape(*leading, self.dims[-1])
        if self.squeeze_output:
            out = out[..., 0]                  # Squeeze(-1): zero-cost index
        return out


# --------------------------------------------------------------------------
# Pure-JAX reference of the same forward pass
# --------------------------------------------------------------------------
def ref_forward(x, weights, biases, acts, squeeze_output):
    h = x
    for w, b, a in zip(weights, biases, acts):
        h = h @ w + b
        h = _apply_activation(h, a)
    if squeeze_output:
        h = h[..., 0]
    return h


# --------------------------------------------------------------------------
# Demo / correctness checks
# --------------------------------------------------------------------------
if __name__ == "__main__":
    key = jax.random.PRNGKey(0)
    pkey, pkey2, xkey = jax.random.split(key, 3)

    x = jax.random.normal(xkey, (2, 4, 32), dtype=jnp.float32)

    # 1) Small MLP, f32, auto -> fully fused single-kernel path, squeeze(-1).
    dims = (32, 64, 64, 1)
    mlp = MLPPallas(dims, pkey, activation="relu",
                    output_activation=None, squeeze_output=True)
    out = mlp(x)
    jax.block_until_ready(out)
    acts = ("relu", "relu", None)
    ref = ref_forward(x, mlp.weights, mlp.biases, acts, squeeze_output=True)
    assert out.shape == (2, 4), out.shape
    assert out.dtype == jnp.float32
    assert jnp.allclose(out, ref, rtol=1e-4, atol=1e-4)

    # 2) Same MLP with bf16 MXU feed (f32 accumulate) -> looser tolerance.
    mlp_bf16 = MLPPallas(dims, pkey, activation="relu",
                         output_activation=None, squeeze_output=True,
                         compute_dtype=jnp.bfloat16)
    out_bf16 = mlp_bf16(x)
    jax.block_until_ready(out_bf16)
    assert out_bf16.shape == (2, 4)
    assert jnp.allclose(out_bf16, ref, rtol=5e-2, atol=5e-2)

    # 3) Force the per-layer tiled-GEMM fallback path (odd widths, tanh out).
    dims2 = (32, 96, 40)
    mlp2 = MLPPallas(dims2, pkey2, activation="relu",
                     output_activation="tanh", squeeze_output=False,
                     fuse=False)
    out2 = mlp2(x)
    jax.block_until_ready(out2)
    ref2 = ref_forward(x, mlp2.weights, mlp2.biases, ("relu", "tanh"),
                       squeeze_output=False)
    assert out2.shape == (2, 4, 40), out2.shape
    assert jnp.allclose(out2, ref2, rtol=1e-4, atol=1e-4)

    print("KERNEL_OK")
</pallas_src>

<mosaic_0001>
module attributes {stable_mosaic.version = 11 : i64} {
  func.func @_fused_mlp_kernel(%arg0: i32, %arg1: memref<8x32xf32, #tpu.memory_space<vmem>>, %arg2: memref<32x64xf32, #tpu.memory_space<vmem>>, %arg3: memref<64x64xf32, #tpu.memory_space<vmem>>, %arg4: memref<64x128xf32, #tpu.memory_space<vmem>>, %arg5: memref<1x64xf32, #tpu.memory_space<vmem>>, %arg6: memref<1x64xf32, #tpu.memory_space<vmem>>, %arg7: memref<1x128xf32, #tpu.memory_space<vmem>>, %arg8: memref<8x128xf32, #tpu.memory_space<vmem>>) attributes {dimension_semantics = [#tpu.dimension_semantics<parallel>], iteration_bounds = array<i64: 1>, scalar_prefetch = 0 : i64, scratch_operands = 0 : i64, tpu.core_type = #tpu.core_type<tc>, window_params = [{transform_indices = @transform_0, window_bounds = array<i64: 8, 32>}, {pipeline_mode = #tpu.pipeline_mode<synchronous>, transform_indices = @transform_1, window_bounds = array<i64: 32, 64>}, {pipeline_mode = #tpu.pipeline_mode<synchronous>, transform_indices = @transform_2, window_bounds = array<i64: 64, 64>}, {pipeline_mode = #tpu.pipeline_mode<synchronous>, transform_indices = @transform_3, window_bounds = array<i64: 64, 128>}, {pipeline_mode = #tpu.pipeline_mode<synchronous>, transform_indices = @transform_4, window_bounds = array<i64: 1, 64>}, {pipeline_mode = #tpu.pipeline_mode<synchronous>, transform_indices = @transform_5, window_bounds = array<i64: 1, 64>}, {pipeline_mode = #tpu.pipeline_mode<synchronous>, transform_indices = @transform_6, window_bounds = array<i64: 1, 128>}, {transform_indices = @transform_7, window_bounds = array<i64: 8, 128>}]} {
    %c0 = arith.constant 0 : index
    %c0_0 = arith.constant 0 : index
    %0 = vector.load %arg1[%c0, %c0_0] : memref<8x32xf32, #tpu.memory_space<vmem>>, vector<8x32xf32>
    %c0_1 = arith.constant 0 : index
    %c0_2 = arith.constant 0 : index
    %1 = vector.load %arg2[%c0_1, %c0_2] : memref<32x64xf32, #tpu.memory_space<vmem>>, vector<32x64xf32>
    %cst = arith.constant dense<0.000000e+00> : vector<8x64xf32>
    %2 = tpu.matmul %0, %1, %cst {dimension_numbers = #tpu.dot_dimension_numbers<[1], [0], [0], [1], [0, 0, 1, 1], [], []>} : vector<8x32xf32>, vector<32x64xf32>, vector<8x64xf32> -> vector<8x64xf32>
    %c0_3 = arith.constant 0 : index
    %c0_4 = arith.constant 0 : index
    %3 = vector.load %arg5[%c0_3, %c0_4] : memref<1x64xf32, #tpu.memory_space<vmem>>, vector<1x64xf32>
    %4 = vector.broadcast %3 : vector<1x64xf32> to vector<8x64xf32>
    %5 = arith.addf %2, %4 : vector<8x64xf32>
    %cst_5 = arith.constant 0.000000e+00 : f32
    %6 = vector.broadcast %cst_5 : f32 to vector<8x64xf32>
    %7 = arith.maximumf %5, %6 : vector<8x64xf32>
    %c0_6 = arith.constant 0 : index
    %c0_7 = arith.constant 0 : index
    %8 = vector.load %arg3[%c0_6, %c0_7] : memref<64x64xf32, #tpu.memory_space<vmem>>, vector<64x64xf32>
    %cst_8 = arith.constant dense<0.000000e+00> : vector<8x64xf32>
    %9 = tpu.matmul %7, %8, %cst_8 {dimension_numbers = #tpu.dot_dimension_numbers<[1], [0], [0], [1], [0, 0, 1, 1], [], []>} : vector<8x64xf32>, vector<64x64xf32>, vector<8x64xf32> -> vector<8x64xf32>
    %c0_9 = arith.constant 0 : index
    %c0_10 = arith.constant 0 : index
    %10 = vector.load %arg6[%c0_9, %c0_10] : memref<1x64xf32, #tpu.memory_space<vmem>>, vector<1x64xf32>
    %11 = vector.broadcast %10 : vector<1x64xf32> to vector<8x64xf32>
    %12 = arith.addf %9, %11 : vector<8x64xf32>
    %cst_11 = arith.constant 0.000000e+00 : f32
    %13 = vector.broadcast %cst_11 : f32 to vector<8x64xf32>
    %14 = arith.maximumf %12, %13 : vector<8x64xf32>
    %c0_12 = arith.constant 0 : index
    %c0_13 = arith.constant 0 : index
    %15 = vector.load %arg4[%c0_12, %c0_13] : memref<64x128xf32, #tpu.memory_space<vmem>>, vector<64x128xf32>
    %cst_14 = arith.constant dense<0.000000e+00> : vector<8x128xf32>
    %16 = tpu.matmul %14, %15, %cst_14 {dimension_numbers = #tpu.dot_dimension_numbers<[1], [0], [0], [1], [0, 0, 1, 1], [], []>} : vector<8x64xf32>, vector<64x128xf32>, vector<8x128xf32> -> vector<8x128xf32>
    %c0_15 = arith.constant 0 : index
    %c0_16 = arith.constant 0 : index
    %17 = vector.load %arg7[%c0_15, %c0_16] : memref<1x128xf32, #tpu.memory_space<vmem>>, vector<1x128xf32>
    %18 = vector.broadcast %17 : vector<1x128xf32> to vector<8x128xf32>
    %19 = arith.addf %16, %18 : vector<8x128xf32>
    %c0_17 = arith.constant 0 : index
    %c0_18 = arith.constant 0 : index
    %20 = vector.load %arg8[%c0_17, %c0_18] : memref<8x128xf32, #tpu.memory_space<vmem>>, vector<8x128xf32>
    tpu.vector_store %arg8[%c0_17, %c0_18], %19 {strides = array<i32>} : memref<8x128xf32, #tpu.memory_space<vmem>>, vector<8x128xf32>,
    return
  }
  func.func @transform_0(%arg0: i32) -> (i32, i32) {
    %c0_i32 = arith.constant 0 : i32
    %c0_i32_0 = arith.constant 0 : i32
    return %arg0, %c0_i32 : i32, i32
  }
  func.func @transform_1(%arg0: i32) -> (i32, i32) {
    %c0_i32 = arith.constant 0 : i32
    %c0_i32_0 = arith.constant 0 : i32
    %c0_i32_1 = arith.constant 0 : i32
    return %c0_i32, %c0_i32_0 : i32, i32
  }
  func.func @transform_2(%arg0: i32) -> (i32, i32) {
    %c0_i32 = arith.constant 0 : i32
    %c0_i32_0 = arith.constant 0 : i32
    %c0_i32_1 = arith.constant 0 : i32
    return %c0_i32, %c0_i32_0 : i32, i32
  }
  func.func @transform_3(%arg0: i32) -> (i32, i32) {
    %c0_i32 = arith.constant 0 : i32
    %c0_i32_0 = arith.constant 0 : i32
    %c0_i32_1 = arith.constant 0 : i32
    return %c0_i32, %c0_i32_0 : i32, i32
  }
  func.func @transform_4(%arg0: i32) -> (i32, i32) {
    %c0_i32 = arith.constant 0 : i32
    %c0_i32_0 = arith.constant 0 : i32
    %c0_i32_1 = arith.constant 0 : i32
    return %c0_i32, %c0_i32_0 : i32, i32
  }
  func.func @transform_5(%arg0: i32) -> (i32, i32) {
    %c0_i32 = arith.constant 0 : i32
    %c0_i32_0 = arith.constant 0 : i32
    %c0_i32_1 = arith.constant 0 : i32
    return %c0_i32, %c0_i32_0 : i32, i32
  }
  func.func @transform_6(%arg0: i32) -> (i32, i32) {
    %c0_i32 = arith.constant 0 : i32
    %c0_i32_0 = arith.constant 0 : i32
    %c0_i32_1 = arith.constant 0 : i32
    return %c0_i32, %c0_i32_0 : i32, i32
  }
  func.func @transform_7(%arg0: i32) -> (i32, i32) {
    %c0_i32 = arith.constant 0 : i32
    %c0_i32_0 = arith.constant 0 : i32
    return %arg0, %c0_i32 : i32, i32
  }
}

</mosaic_0001>

<bundles_post_ra>
// kernel: tpu_custom_call.1
= control target key start
LH: loop header
LB: loop body
LE: loop exit
PB: predicated region body
PF: predicated region fallthrough
CT: control target
= control target key end

     0   :  { %12 = vsyncpa [#allocation3], 0  ;;  %s668_s0 = inlined_call_operand.hbm [shape: f32[8,32], index: 0, kind: input, shape index: {}]   ;;  %s669_s1 = inlined_call_operand.hbm [shape: f32[32,64], index: 1, kind: input, shape index: {}]   ;;  %s670_s2 = inlined_call_operand.hbm [shape: f32[64,64], index: 2, kind: input, shape index: {}]   ;;  %s671_s3 = inlined_call_operand.hbm [shape: f32[64,128], index: 3, kind: input, shape index: {}]   ;;  %s672_s4 = inlined_call_operand.vmem [shape: f32[1,64], index: 4, kind: input, shape index: {}]   ;;  %s673_s5 = inlined_call_operand.vmem [shape: f32[1,64], index: 5, kind: input, shape index: {}]   ;;  %s674_s6 = inlined_call_operand.vmem [shape: f32[1,128], index: 6, kind: input, shape index: {}]   ;;  %s675_s7 = inlined_call_operand.hbm [shape: f32[8,128], index: 7, kind: output, shape index: {}]  }
   0x1   :  { %13 = vsyncpa [#allocation6], 0 }
   0x2   :  { %14 = vsyncpa [#allocation9], 0 }
   0x3   :  { %15 = vsyncpa [#allocation4], 0  ;;  %s558_s24 = smov [#allocation5]  }
   0x4   :  { %s31_s25 = sshll.u32 %s558_s24, 4  ;;  %s32_s25 = int_to_ptr.vmem [resolvable:$true] %s31_s25 }
   0x5   :  { %s458_s26 = scalar_lea.vmem %s32_s25, 512  ;;  %p463_p1 = scmp.lt.s32.totalorder %s32_s25, %s32_s25 }
   0x6   :  { %p459_p0 = scmp.ne.s32.totalorder %s32_s25, %s458_s26  ;;  %p464_p2 = scmp.lt.s32.totalorder %s458_s26, %s458_s26 }
   0x8   :  { %p465_p3 = por %p464_p2, %p463_p1 }
   0xa   :  { %p466_p4 = pnand %p465_p3, %p459_p0 }
   0xc   :  { %469 = shalt.err (!%p466_p4)
}
   0xd   :  { %s559_s27 = smov 128   ;;  %s560_s28 = smov 8  }
   0xe   :  { %37 = dma.hbm_to_vmem [thread:$0]  %s669_s1, 512, %s32_s25, [#allocation6], %s559_s27, %s559_s27, %s560_s28  }
   0xf   :  { %s561_s8 = smov [#allocation2]   ;;  %s562_s10 = smov [#allocation7]  }
  0x10   :  { %s22_s9 = sshll.u32 %s561_s8, 4  ;;  %s43_s11 = sshll.u32 %s562_s10, 4  ;;  %s23_s9 = int_to_ptr.vmem [resolvable:$true] %s22_s9  ;;  %s44_s11 = int_to_ptr.vmem [resolvable:$true] %s43_s11 }
  0x11   :  { %s478_s12 = scalar_lea.vmem %s23_s9, 128  ;;  %p483_p6 = scmp.lt.s32.totalorder %s23_s9, %s23_s9 }
  0x12   :  { %p479_p5 = scmp.ne.s32.totalorder %s23_s9, %s478_s12  ;;  %p484_p7 = scmp.lt.s32.totalorder %s478_s12, %s478_s12 }
  0x14   :  { %p485_p8 = por %p484_p7, %p483_p6 }
  0x16   :  { %p486_p9 = pnand %p485_p8, %p479_p5 }
  0x18   :  { %489 = shalt.err (!%p486_p9)
}
  0x19   :  { %25 = dma.hbm_to_vmem [thread:$0]  %s668_s0, 128, %s23_s9, [#allocation3]  }
  0x1a   :  { %s498_s15 = scalar_lea.vmem %s44_s11, 1024  ;;  %p503_p11 = scmp.lt.s32.totalorder %s44_s11, %s44_s11 }
  0x1b   :  { %p499_p10 = scmp.ne.s32.totalorder %s44_s11, %s498_s15  ;;  %p504_p12 = scmp.lt.s32.totalorder %s498_s15, %s498_s15 }
  0x1d   :  { %p505_p13 = por %p504_p12, %p503_p11 }
  0x1f   :  { %p506_p0 = pnand %p505_p13, %p499_p10 }
  0x21   :  { %509 = shalt.err (!%p506_p0)
}
  0x22   :  { %49 = dma.hbm_to_vmem [thread:$0]  %s670_s2, 1024, %s44_s11, [#allocation6], %s559_s27, %s559_s27, %s560_s28  }
  0x23   :  { %s563_s17 = smov [#allocation8]  }
  0x24   :  { %s55_s18 = sshll.u32 %s563_s17, 4  ;;  %s56_s18 = int_to_ptr.vmem [resolvable:$true] %s55_s18 }
  0x25   :  { %s518_s19 = scalar_lea.vmem %s56_s18, 1024  ;;  %p523_p2 = scmp.lt.s32.totalorder %s56_s18, %s56_s18 }
  0x26   :  { %p519_p1 = scmp.ne.s32.totalorder %s56_s18, %s518_s19  ;;  %p524_p3 = scmp.lt.s32.totalorder %s518_s19, %s518_s19 }
  0x28   :  { %p525_p4 = por %p524_p3, %p523_p2 }
  0x2a   :  { %p526_p5 = pnand %p525_p4, %p519_p1 }
  0x2c   :  { %529 = shalt.err (!%p526_p5)
}
  0x2d   :  { %61 = dma.hbm_to_vmem [thread:$0]  %s671_s3, 1024, %s56_s18, [#allocation9], %s559_s27, %s559_s27, %s560_s28  }
  0x2e   :  { %550 = dma.done.wait [#allocation3], 128  }
  0x2f   :  { %551 = vsyncadd [#allocation3], 4294967168 }
  0x30   :  { %552 = dma.done.wait [#allocation6], 1536  }
  0x31   :  { %553 = vsyncadd [#allocation6], 4294965760 }
  0x32   :  { %554 = dma.done.wait [#allocation9], 1024  }
  0x33   :  { %555 = vsyncadd [#allocation9], 4294966272  ;;  %v564_v0 = vmov 0.0   ;;  %vm565_vm0 = vmmov 0   ;;  %v84_v1 = vld [vmem:[#allocation5 + $0x18] sm:$0xff]  ;;  %v83_v2 = vld [vmem:[#allocation5 + $0x10] sm:$0xff] }
  0x34   :  { %392 = vmatprep.subr.mxu0 %v564_v0  ;;  %400 = vmatprep.mubr.msk.f32.mxu0 %vm565_vm0, %v564_v0  ;;  %v174_v3 = vld [vmem:[#allocation7 + $0x38] sm:$0xff]  ;;  %v82_v4 = vld [vmem:[#allocation5 + $0x8] sm:$0xff]  ;;  %v173_v5 = vld [vmem:[#allocation7 + $0x30] sm:$0xff]  ;;  %vm92_vm1 = vcmask 261120   ;;  %vm182_vm2 = vcmask 523264   ;;  %s566_s24 = smov [#allocation10]  }
  0x35   :  { %403 = vmatprep.subr.mxu1 %v564_v0  ;;  %419 = vmatprep.mubr.msk.f32.mxu1 %vm565_vm0, %v564_v0  ;;  %v172_v6 = vld [vmem:[#allocation7 + $0x28] sm:$0xff]  ;;  %v81_v7 = vld [vmem:[#allocation5] sm:$0xff]  ;;  %v80_v8 = vld [vmem:[#allocation2] sm:$0xff]  ;;  %s352_s25 = sshll.u32 %s566_s24, 4  ;;  %s353_s25 = int_to_ptr.vmem [resolvable:$true] %s352_s25 }
  0x36   :  { %393 = vmatpush3.msra.mxu0 %v84_v1  ;;  %404 = vmatpush3.msra.mxu1 %v174_v3  ;;  %v171_v9 = vld [vmem:[#allocation7 + $0x20] sm:$0xff]  ;;  %v170_v10 = vld [vmem:[#allocation7 + $0x18] sm:$0xff]  ;;  %v169_v11 = vld [vmem:[#allocation7 + $0x10] sm:$0xff]  ;;  %s530_s26 = scalar_lea.vmem %s353_s25, 128  ;;  %p535_p7 = scmp.lt.s32.totalorder %s353_s25, %s353_s25 }
  0x37   :  { %394 = vmatprep.subr.mxu0 %v564_v0  ;;  %405 = vmatprep.subr.mxu1 %v564_v0  ;;  %v168_v12 = vld [vmem:[#allocation7 + $0x8] sm:$0xff]  ;;  %v167_v13 = vld [vmem:[#allocation7] sm:$0xff]  ;;  %v264_v14 = vld [vmem:[#allocation8 + $0x38] sm:$0xff]  ;;  %p531_p6 = scmp.ne.s32.totalorder %s353_s25, %s530_s26  ;;  %p536_p8 = scmp.lt.s32.totalorder %s530_s26, %s530_s26 }
  0x38   :  { %395 = vmatpush3.msra.mxu0 %v83_v2  ;;  %406 = vmatpush3.msra.mxu1 %v173_v5  ;;  %v263_v15 = vld [vmem:[#allocation8 + $0x30] sm:$0xff]  ;;  %v262_v16 = vld [vmem:[#allocation8 + $0x28] sm:$0xff]  ;;  %v261_v17 = vld [vmem:[#allocation8 + $0x20] sm:$0xff] }
  0x39   :  { %396 = vmatprep.subr.mxu0 %v564_v0  ;;  %407 = vmatprep.subr.mxu1 %v564_v0  ;;  %v260_v18 = vld [vmem:[#allocation8 + $0x18] sm:$0xff]  ;;  %v259_v24 = vld [vmem:[#allocation8 + $0x10] sm:$0xff]  ;;  %v258_v25 = vld [vmem:[#allocation8 + $0x8] sm:$0xff]  ;;  %p537_p9 = por %p536_p8, %p535_p7 }
  0x3a   :  { %397 = vmatpush3.msra.mxu0 %v82_v4  ;;  %408 = vmatpush3.msra.mxu1 %v172_v6  ;;  %v363_v19 = vld [vmem:[%s672_s4] ss:$0 sm:$0xff]  ;;  %v257_v26 = vld [vmem:[#allocation8] sm:$0xff] }
  0x3b   :  { %398 = vmatprep.subr.mxu0 %v564_v0  ;;  %409 = vmatprep.subr.mxu1 %v564_v0  ;;  %v365_v27 = vld [vmem:[%s673_s5] ss:$0 sm:$0xff]  ;;  %p538_p10 = pnand %p537_p9, %p531_p6 }
  0x3c   :  { %399 = vmatpush3.msra.mxu0 %v81_v7  ;;  %410 = vmatpush3.msra.mxu1 %v171_v9  ;;  %v367_v32 = vld [vmem:[%s674_s6] ss:$0 sm:$0xff] }
  0x3d   :  { %401 = vmatmul.mubr.msk.f32.vlgmr.msra.gmra.mxu0 %vm92_vm1, %v80_v8  ;;  %411 = vmatprep.subr.mxu1 %v564_v0 }
  0x3e   :  { %422 = vmatprep.subr.mxu0 %v564_v0  ;;  %412 = vmatpush3.msra.mxu1 %v170_v10 }
  0x3f   :  { %438 = vmatprep.mubr.msk.f32.mxu0 %vm565_vm0, %v564_v0  ;;  %413 = vmatprep.subr.mxu1 %v564_v0 }
  0x40   :  { %414 = vmatpush3.msra.mxu1 %v169_v11  ;;  %423 = vmatpush3.msra.mxu0 %v264_v14 }
  0x41   :  { %415 = vmatprep.subr.mxu1 %v564_v0  ;;  %424 = vmatprep.subr.mxu0 %v564_v0 }
  0x42   :  { %416 = vmatpush3.msra.mxu1 %v168_v12  ;;  %425 = vmatpush3.msra.mxu0 %v263_v15 }
  0x43   :  { %417 = vmatprep.subr.mxu1 %v564_v0  ;;  %426 = vmatprep.subr.mxu0 %v564_v0 }
  0x44   :  { %418 = vmatpush3.msra.mxu1 %v167_v13  ;;  %427 = vmatpush3.msra.mxu0 %v262_v16 }
  0x45   :  { %428 = vmatprep.subr.mxu0 %v564_v0 }
  0x46   :  { %429 = vmatpush3.msra.mxu0 %v261_v17 }
  0x47   :  { %430 = vmatprep.subr.mxu0 %v564_v0 }
  0x48   :  { %431 = vmatpush3.msra.mxu0 %v260_v18 }
  0x49   :  { %432 = vmatprep.subr.mxu0 %v564_v0 }
  0x4a   :  { %433 = vmatpush3.msra.mxu0 %v259_v24 }
  0x4b   :  { %434 = vmatprep.subr.mxu0 %v564_v0 }
  0x4c   :  { %435 = vmatpush3.msra.mxu0 %v258_v25 }
  0x4d   :  { %436 = vmatprep.subr.mxu0 %v564_v0 }
  0x4e   :  { %437 = vmatpush3.msra.mxu0 %v257_v26 }
  0xfd   :  { %v162_v20 = vpop.f32.mrf.mxu0 }
  0xfe   :  { %v163_v21 = vadd.f32 %v363_v19, %v162_v20 }
  0xff   :  { %v402_v22 = vpop.f32.mrf.mxu0 }
 0x100   :  { %v166_v23 = vmax.f32 %v163_v21, 0.0 }
 0x102   :  { %420 = vmatmul.mubr.msk.f32.vlgmr.msra.gmra.mxu1 %vm182_vm2, %v166_v23 }
 0x1c2   :  { %v252_v28 = vpop.f32.mrf.mxu1 }
 0x1c3   :  { %v253_v29 = vadd.f32 %v365_v27, %v252_v28 }
 0x1c4   :  { %v421_v30 = vpop.f32.mrf.mxu1 }
 0x1c5   :  { %v256_v31 = vmax.f32 %v253_v29, 0.0 }
 0x1c7   :  { %439 = vmatmul.mubr.msk.f32.vlgmr.msra.gmra.mxu0 %vm182_vm2, %v256_v31 }
 0x287   :  { %v341_v33 = vpop.f32.mrf.mxu0 }
 0x288   :  { %v342_v34 = vadd.f32 %v367_v32, %v341_v33 }
 0x289   :  { %v440_v35 = vpop.f32.mrf.mxu0 }
 0x28a   :  { %345 = vst [vmem:[#allocation10] sm:$0xff] %v342_v34 }
 0x28b   :  { %541 = shalt.err (!%p538_p10)
}
 0x28c   :  { %355 = dma.vmem_to_hbm [thread:$0]  %s353_s25, 128, %s675_s7, [#allocation4]  }
 0x28d   :  { %556 = dma.done.wait [#allocation4], 128  }
 0x28e   :  { %557 = vsyncadd [#allocation4], 4294967168 }
 0x28f   :  { %359 = vsyncpa [#allocation3], 1 }
 0x290   :  { %360 = vsyncpa [#allocation6], 1 }
 0x291   :  { %361 = vsyncpa [#allocation9], 1 }
 0x292   :  { %362 = vsyncpa [#allocation4], 1 }

</bundles_post_ra>
